<compile_context>
chip_gen: v6e
topology: v6e:2x2x1
jax: 0.10.0
libtpu: 0.0.40
codegen_flags: <defaults>
</compile_context>

<pallas_src>
import functools

import jax
import jax.numpy as jnp
from jax.experimental import pallas as pl
from jax.experimental.pallas import tpu as pltpu


# ----------------------------------------------------------------------------
# Fused forward kernel
# ----------------------------------------------------------------------------
def _fused_kernel(*refs, n_base_layers, n_hops, use_base, use_mhc):
    """Whole GlobalModel forward. refs = (x, adj, [base w/b pairs], [mhc hop ws, bm],
    [one lin-weight slab per active sub-model], lin_b, out_ref)."""
    o_ref = refs[-1]
    it = iter(refs[:-1])
    x = next(it)[...]
    adj = next(it)[...]

    embs = []

    if use_base:
        # GCN-style: h = A @ relu(A @ x @ W1 + b1) @ W2 + b2  (relu on all but last)
        h = x
        for layer in range(n_base_layers):
            w = next(it)[...]
            b = next(it)[...]
            d_in, d_out = w.shape
            if d_out < d_in:
                # project first so the N x N aggregation runs at the smaller dim
                h = jnp.dot(h, w, preferred_element_type=jnp.float32)
                h = jnp.dot(adj, h, preferred_element_type=jnp.float32)
            else:
                h = jnp.dot(adj, h, preferred_element_type=jnp.float32)
                h = jnp.dot(h, w, preferred_element_type=jnp.float32)
            h = h + b
            if layer < n_base_layers - 1:
                h = jnp.maximum(h, 0.0)
        embs.append(h)

    if use_mhc:
        # Multi-hop conv: relu(sum_{k=0..K} (A^k x) @ W_k + b).
        # (Equivalent to the single Z @ W_stacked matmul with Z = [x, Ax, ..., A^K x];
        #  kept as summed dots so no runtime lane-concat is needed — everything stays
        #  in vregs inside the fused kernel either way.)
        hop_ws = [next(it)[...] for _ in range(n_hops + 1)]
        bm = next(it)[...]
        z = x
        acc = jnp.dot(z, hop_ws[0], preferred_element_type=jnp.float32)
        for k in range(1, n_hops + 1):
            z = jnp.dot(adj, z, preferred_element_type=jnp.float32)
            acc = acc + jnp.dot(z, hop_ws[k], preferred_element_type=jnp.float32)
        embs.append(jnp.maximum(acc + bm, 0.0))

    # Final Linear over concat(embs): row-split weight => sum of partial matmuls,
    # the concat never materializes.
    lin_ws = [next(it)[...] for _ in range(len(embs))]
    lin_b = next(it)[...]
    out = jnp.dot(embs[0], lin_ws[0], preferred_element_type=jnp.float32)
    for h, w in zip(embs[1:], lin_ws[1:]):
        out = out + jnp.dot(h, w, preferred_element_type=jnp.float32)
    o_ref[...] = (out + lin_b).astype(o_ref.dtype)


def _full_block(shape):
    ndim = len(shape)
    return pl.BlockSpec(shape, lambda i, _n=ndim: (0,) * _n)


def fused_global_forward(x, adj, base_params, mhc_params, lin_ws_padded, lin_b_padded,
                         *, num_classes, n_hops):
    """Run the whole GlobalModel forward as a single pallas_call."""
    n = x.shape[0]
    n_pad = ((n + 7) // 8) * 8                     # sublane-align the row dim
    if n_pad != n:
        x = jnp.pad(x, ((0, n_pad - n), (0, 0)))
        adj = jnp.pad(adj, ((0, n_pad - n), (0, n_pad - n)))
    c_pad = lin_b_padded.shape[1]                  # lane-dense (multiple of 128)

    use_base = base_params is not None
    use_mhc = mhc_params is not None

    inputs = [x, adj]
    if use_base:
        for w, b in base_params:
            inputs += [w, b]
    if use_mhc:
        hop_ws, bm = mhc_params
        inputs += list(hop_ws) + [bm]
    inputs += list(lin_ws_padded) + [lin_b_padded]

    kernel = functools.partial(
        _fused_kernel,
        n_base_layers=len(base_params) if use_base else 0,
        n_hops=n_hops,
        use_base=use_base,
        use_mhc=use_mhc,
    )

    out = pl.pallas_call(
        kernel,
        out_shape=jax.ShapeDtypeStruct((n_pad, c_pad), jnp.float32),
        grid=(1,),
        in_specs=[_full_block(a.shape) for a in inputs],
        out_specs=_full_block((n_pad, c_pad)),
        compiler_params=pltpu.CompilerParams(
            dimension_semantics=("arbitrary",)),
    )(*inputs)

    return out[:n, :num_classes]


# ----------------------------------------------------------------------------
# Parameter init (deterministic, glorot-uniform like stand-in)
# ----------------------------------------------------------------------------
def _glorot(key, shape):
    fan_in, fan_out = shape
    limit = (6.0 / (fan_in + fan_out)) ** 0.5
    return jax.random.uniform(key, shape, jnp.float32, -limit, limit)


# ----------------------------------------------------------------------------
# GlobalModel
# ----------------------------------------------------------------------------
class GlobalModel:
    def __init__(
        self,
        num_classes,
        in_dim,
        out_dim,
        only_base_gnn,
        only_mhc,
        use_together,
        base_layer=2,
        mhc_layer=1,
        mhc_num_hops=3,
        key=jax.random.PRNGKey(42),
    ):
        assert use_together + only_mhc + only_base_gnn <= 1
        del mhc_layer  # mhc_layer=1 in the reference configuration
        self.num_classes = num_classes
        self.num_hops = mhc_num_hops
        self.use_base = bool(only_base_gnn or use_together)
        self.use_mhc = bool(only_mhc or use_together)

        k_lin, k_gnn, k_mhc = jax.random.split(key, 3)

        # Base_GNN stand-in: base_layer GCN layers (weights + zero biases as (1, d) rows)
        self.base_params = None
        if self.use_base:
            dims = [in_dim] + [out_dim] * base_layer
            keys = jax.random.split(k_gnn, base_layer)
            self.base_params = [
                (_glorot(keys[i], (dims[i], dims[i + 1])),
                 jnp.zeros((1, dims[i + 1]), jnp.float32))
                for i in range(base_layer)
            ]

        # MHC_GNN stand-in: num_hops+1 hop weights + bias
        self.mhc_params = None
        if self.use_mhc:
            keys = jax.random.split(k_mhc, mhc_num_hops + 1)
            hop_ws = tuple(
                _glorot(keys[k], (in_dim, out_dim)) for k in range(mhc_num_hops + 1)
            )
            self.mhc_params = (hop_ws, jnp.zeros((1, out_dim), jnp.float32))

        # Final Linear(lin_in -> num_classes): weight row-split per active sub-model
        # (so the concat is never materialized) and zero-padded on the class dim to
        # a multiple of 128 so the kernel's single HBM store is lane-dense.
        n_models = int(self.use_base) + int(self.use_mhc)
        lin_in = n_models * out_dim
        lin_w = _glorot(k_lin, (lin_in, num_classes))
        c_pad = -(-num_classes // 128) * 128
        pad_cols = ((0, 0), (0, c_pad - num_classes))
        self.lin_ws_padded = tuple(
            jnp.pad(lin_w[m * out_dim:(m + 1) * out_dim, :], pad_cols)
            for m in range(n_models)
        )
        self.lin_b_padded = jnp.pad(jnp.zeros((1, num_classes), jnp.float32), pad_cols)

    def __call__(self, data):
        return fused_global_forward(
            data["x"], data["adj"],
            self.base_params, self.mhc_params,
            self.lin_ws_padded, self.lin_b_padded,
            num_classes=self.num_classes, n_hops=self.num_hops,
        )


# ----------------------------------------------------------------------------
# Driver
# ----------------------------------------------------------------------------
if __name__ == "__main__":
    N = 16           # nodes
    IN_DIM = 8       # input node-feature dim
    OUT_DIM = 32     # hidden / embedding dim per sub-model
    NUM_CLASSES = 4

    key = jax.random.PRNGKey(0)
    kx, ka = jax.random.split(key)

    x = jax.random.normal(kx, (N, IN_DIM), jnp.float32)

    # deterministic dense, symmetric, self-looped, row-normalized adjacency
    rand = jax.random.uniform(ka, (N, N))
    adj = (rand < 0.3).astype(jnp.float32)
    adj = jnp.clip(adj + adj.T + jnp.eye(N, dtype=jnp.float32), 0.0, 1.0)
    adj = adj / jnp.sum(adj, axis=1, keepdims=True)

    data = {"x": x, "adj": adj}

    model = GlobalModel(
        num_classes=NUM_CLASSES,
        in_dim=IN_DIM,
        out_dim=OUT_DIM,
        only_base_gnn=False,
        only_mhc=False,
        use_together=True,   # both sub-models, (implicit) concat, Linear(2*out_dim -> classes)
    )

    out = model(data)
    out = jax.block_until_ready(out)
    assert out.shape == (N, NUM_CLASSES), out.shape
    print("KERNEL_OK")
</pallas_src>

<mosaic_0001>
module attributes {stable_mosaic.version = 11 : i64} {
  func.func @_fused_kernel(%arg0: i32, %arg1: memref<16x8xf32, #tpu.memory_space<vmem>>, %arg2: memref<16x16xf32, #tpu.memory_space<vmem>>, %arg3: memref<8x32xf32, #tpu.memory_space<vmem>>, %arg4: memref<1x32xf32, #tpu.memory_space<vmem>>, %arg5: memref<32x32xf32, #tpu.memory_space<vmem>>, %arg6: memref<1x32xf32, #tpu.memory_space<vmem>>, %arg7: memref<8x32xf32, #tpu.memory_space<vmem>>, %arg8: memref<8x32xf32, #tpu.memory_space<vmem>>, %arg9: memref<8x32xf32, #tpu.memory_space<vmem>>, %arg10: memref<8x32xf32, #tpu.memory_space<vmem>>, %arg11: memref<1x32xf32, #tpu.memory_space<vmem>>, %arg12: memref<32x128xf32, #tpu.memory_space<vmem>>, %arg13: memref<32x128xf32, #tpu.memory_space<vmem>>, %arg14: memref<1x128xf32, #tpu.memory_space<vmem>>, %arg15: memref<16x128xf32, #tpu.memory_space<vmem>>) attributes {dimension_semantics = [#tpu.dimension_semantics<arbitrary>], iteration_bounds = array<i64: 1>, scalar_prefetch = 0 : i64, scratch_operands = 0 : i64, tpu.core_type = #tpu.core_type<tc>, window_params = [{pipeline_mode = #tpu.pipeline_mode<synchronous>, transform_indices = @transform_0, window_bounds = array<i64: 16, 8>}, {pipeline_mode = #tpu.pipeline_mode<synchronous>, transform_indices = @transform_1, window_bounds = array<i64: 16, 16>}, {pipeline_mode = #tpu.pipeline_mode<synchronous>, transform_indices = @transform_2, window_bounds = array<i64: 8, 32>}, {pipeline_mode = #tpu.pipeline_mode<synchronous>, transform_indices = @transform_3, window_bounds = array<i64: 1, 32>}, {pipeline_mode = #tpu.pipeline_mode<synchronous>, transform_indices = @transform_4, window_bounds = array<i64: 32, 32>}, {pipeline_mode = #tpu.pipeline_mode<synchronous>, transform_indices = @transform_5, window_bounds = array<i64: 1, 32>}, {pipeline_mode = #tpu.pipeline_mode<synchronous>, transform_indices = @transform_6, window_bounds = array<i64: 8, 32>}, {pipeline_mode = #tpu.pipeline_mode<synchronous>, transform_indices = @transform_7, window_bounds = array<i64: 8, 32>}, {pipeline_mode = #tpu.pipeline_mode<synchronous>, transform_indices = @transform_8, window_bounds = array<i64: 8, 32>}, {pipeline_mode = #tpu.pipeline_mode<synchronous>, transform_indices = @transform_9, window_bounds = array<i64: 8, 32>}, {pipeline_mode = #tpu.pipeline_mode<synchronous>, transform_indices = @transform_10, window_bounds = array<i64: 1, 32>}, {pipeline_mode = #tpu.pipeline_mode<synchronous>, transform_indices = @transform_11, window_bounds = array<i64: 32, 128>}, {pipeline_mode = #tpu.pipeline_mode<synchronous>, transform_indices = @transform_12, window_bounds = array<i64: 32, 128>}, {pipeline_mode = #tpu.pipeline_mode<synchronous>, transform_indices = @transform_13, window_bounds = array<i64: 1, 128>}, {pipeline_mode = #tpu.pipeline_mode<synchronous>, transform_indices = @transform_14, window_bounds = array<i64: 16, 128>}]} {
    %c0 = arith.constant 0 : index
    %c0_0 = arith.constant 0 : index
    %0 = vector.load %arg1[%c0, %c0_0] : memref<16x8xf32, #tpu.memory_space<vmem>>, vector<16x8xf32>
    %c0_1 = arith.constant 0 : index
    %c0_2 = arith.constant 0 : index
    %1 = vector.load %arg2[%c0_1, %c0_2] : memref<16x16xf32, #tpu.memory_space<vmem>>, vector<16x16xf32>
    %c0_3 = arith.constant 0 : index
    %c0_4 = arith.constant 0 : index
    %2 = vector.load %arg3[%c0_3, %c0_4] : memref<8x32xf32, #tpu.memory_space<vmem>>, vector<8x32xf32>
    %c0_5 = arith.constant 0 : index
    %c0_6 = arith.constant 0 : index
    %3 = vector.load %arg4[%c0_5, %c0_6] : memref<1x32xf32, #tpu.memory_space<vmem>>, vector<1x32xf32>
    %cst = arith.constant dense<0.000000e+00> : vector<16x8xf32>
    %4 = tpu.matmul %1, %0, %cst {dimension_numbers = #tpu.dot_dimension_numbers<[1], [0], [0], [1], [0, 0, 1, 1], [], []>} : vector<16x16xf32>, vector<16x8xf32>, vector<16x8xf32> -> vector<16x8xf32>
    %cst_7 = arith.constant dense<0.000000e+00> : vector<16x32xf32>
    %5 = tpu.matmul %4, %2, %cst_7 {dimension_numbers = #tpu.dot_dimension_numbers<[1], [0], [0], [1], [0, 0, 1, 1], [], []>} : vector<16x8xf32>, vector<8x32xf32>, vector<16x32xf32> -> vector<16x32xf32>
    %6 = vector.broadcast %3 : vector<1x32xf32> to vector<16x32xf32>
    %7 = arith.addf %5, %6 : vector<16x32xf32>
    %cst_8 = arith.constant 0.000000e+00 : f32
    %8 = vector.broadcast %cst_8 : f32 to vector<16x32xf32>
    %9 = arith.maximumf %7, %8 : vector<16x32xf32>
    %c0_9 = arith.constant 0 : index
    %c0_10 = arith.constant 0 : index
    %10 = vector.load %arg5[%c0_9, %c0_10] : memref<32x32xf32, #tpu.memory_space<vmem>>, vector<32x32xf32>
    %c0_11 = arith.constant 0 : index
    %c0_12 = arith.constant 0 : index
    %11 = vector.load %arg6[%c0_11, %c0_12] : memref<1x32xf32, #tpu.memory_space<vmem>>, vector<1x32xf32>
    %cst_13 = arith.constant dense<0.000000e+00> : vector<16x32xf32>
    %12 = tpu.matmul %1, %9, %cst_13 {dimension_numbers = #tpu.dot_dimension_numbers<[1], [0], [0], [1], [0, 0, 1, 1], [], []>} : vector<16x16xf32>, vector<16x32xf32>, vector<16x32xf32> -> vector<16x32xf32>
    %cst_14 = arith.constant dense<0.000000e+00> : vector<16x32xf32>
    %13 = tpu.matmul %12, %10, %cst_14 {dimension_numbers = #tpu.dot_dimension_numbers<[1], [0], [0], [1], [0, 0, 1, 1], [], []>} : vector<16x32xf32>, vector<32x32xf32>, vector<16x32xf32> -> vector<16x32xf32>
    %14 = vector.broadcast %11 : vector<1x32xf32> to vector<16x32xf32>
    %15 = arith.addf %13, %14 : vector<16x32xf32>
    %c0_15 = arith.constant 0 : index
    %c0_16 = arith.constant 0 : index
    %16 = vector.load %arg7[%c0_15, %c0_16] : memref<8x32xf32, #tpu.memory_space<vmem>>, vector<8x32xf32>
    %c0_17 = arith.constant 0 : index
    %c0_18 = arith.constant 0 : index
    %17 = vector.load %arg8[%c0_17, %c0_18] : memref<8x32xf32, #tpu.memory_space<vmem>>, vector<8x32xf32>
    %c0_19 = arith.constant 0 : index
    %c0_20 = arith.constant 0 : index
    %18 = vector.load %arg9[%c0_19, %c0_20] : memref<8x32xf32, #tpu.memory_space<vmem>>, vector<8x32xf32>
    %c0_21 = arith.constant 0 : index
    %c0_22 = arith.constant 0 : index
    %19 = vector.load %arg10[%c0_21, %c0_22] : memref<8x32xf32, #tpu.memory_space<vmem>>, vector<8x32xf32>
    %c0_23 = arith.constant 0 : index
    %c0_24 = arith.constant 0 : index
    %20 = vector.load %arg11[%c0_23, %c0_24] : memref<1x32xf32, #tpu.memory_space<vmem>>, vector<1x32xf32>
    %cst_25 = arith.constant dense<0.000000e+00> : vector<16x32xf32>
    %21 = tpu.matmul %0, %16, %cst_25 {dimension_numbers = #tpu.dot_dimension_numbers<[1], [0], [0], [1], [0, 0, 1, 1], [], []>} : vector<16x8xf32>, vector<8x32xf32>, vector<16x32xf32> -> vector<16x32xf32>
    %cst_26 = arith.constant dense<0.000000e+00> : vector<16x8xf32>
    %22 = tpu.matmul %1, %0, %cst_26 {dimension_numbers = #tpu.dot_dimension_numbers<[1], [0], [0], [1], [0, 0, 1, 1], [], []>} : vector<16x16xf32>, vector<16x8xf32>, vector<16x8xf32> -> vector<16x8xf32>
    %cst_27 = arith.constant dense<0.000000e+00> : vector<16x32xf32>
    %23 = tpu.matmul %22, %17, %cst_27 {dimension_numbers = #tpu.dot_dimension_numbers<[1], [0], [0], [1], [0, 0, 1, 1], [], []>} : vector<16x8xf32>, vector<8x32xf32>, vector<16x32xf32> -> vector<16x32xf32>
    %24 = arith.addf %21, %23 : vector<16x32xf32>
    %cst_28 = arith.constant dense<0.000000e+00> : vector<16x8xf32>
    %25 = tpu.matmul %1, %22, %cst_28 {dimension_numbers = #tpu.dot_dimension_numbers<[1], [0], [0], [1], [0, 0, 1, 1], [], []>} : vector<16x16xf32>, vector<16x8xf32>, vector<16x8xf32> -> vector<16x8xf32>
    %cst_29 = arith.constant dense<0.000000e+00> : vector<16x32xf32>
    %26 = tpu.matmul %25, %18, %cst_29 {dimension_numbers = #tpu.dot_dimension_numbers<[1], [0], [0], [1], [0, 0, 1, 1], [], []>} : vector<16x8xf32>, vector<8x32xf32>, vector<16x32xf32> -> vector<16x32xf32>
    %27 = arith.addf %24, %26 : vector<16x32xf32>
    %cst_30 = arith.constant dense<0.000000e+00> : vector<16x8xf32>
    %28 = tpu.matmul %1, %25, %cst_30 {dimension_numbers = #tpu.dot_dimension_numbers<[1], [0], [0], [1], [0, 0, 1, 1], [], []>} : vector<16x16xf32>, vector<16x8xf32>, vector<16x8xf32> -> vector<16x8xf32>
    %cst_31 = arith.constant dense<0.000000e+00> : vector<16x32xf32>
    %29 = tpu.matmul %28, %19, %cst_31 {dimension_numbers = #tpu.dot_dimension_numbers<[1], [0], [0], [1], [0, 0, 1, 1], [], []>} : vector<16x8xf32>, vector<8x32xf32>, vector<16x32xf32> -> vector<16x32xf32>
    %30 = arith.addf %27, %29 : vector<16x32xf32>
    %31 = vector.broadcast %20 : vector<1x32xf32> to vector<16x32xf32>
    %32 = arith.addf %30, %31 : vector<16x32xf32>
    %cst_32 = arith.constant 0.000000e+00 : f32
    %33 = vector.broadcast %cst_32 : f32 to vector<16x32xf32>
    %34 = arith.maximumf %32, %33 : vector<16x32xf32>
    %c0_33 = arith.constant 0 : index
    %c0_34 = arith.constant 0 : index
    %35 = vector.load %arg12[%c0_33, %c0_34] : memref<32x128xf32, #tpu.memory_space<vmem>>, vector<32x128xf32>
    %c0_35 = arith.constant 0 : index
    %c0_36 = arith.constant 0 : index
    %36 = vector.load %arg13[%c0_35, %c0_36] : memref<32x128xf32, #tpu.memory_space<vmem>>, vector<32x128xf32>
    %c0_37 = arith.constant 0 : index
    %c0_38 = arith.constant 0 : index
    %37 = vector.load %arg14[%c0_37, %c0_38] : memref<1x128xf32, #tpu.memory_space<vmem>>, vector<1x128xf32>
    %cst_39 = arith.constant dense<0.000000e+00> : vector<16x128xf32>
    %38 = tpu.matmul %15, %35, %cst_39 {dimension_numbers = #tpu.dot_dimension_numbers<[1], [0], [0], [1], [0, 0, 1, 1], [], []>} : vector<16x32xf32>, vector<32x128xf32>, vector<16x128xf32> -> vector<16x128xf32>
    %cst_40 = arith.constant dense<0.000000e+00> : vector<16x128xf32>
    %39 = tpu.matmul %34, %36, %cst_40 {dimension_numbers = #tpu.dot_dimension_numbers<[1], [0], [0], [1], [0, 0, 1, 1], [], []>} : vector<16x32xf32>, vector<32x128xf32>, vector<16x128xf32> -> vector<16x128xf32>
    %40 = arith.addf %38, %39 : vector<16x128xf32>
    %41 = vector.broadcast %37 : vector<1x128xf32> to vector<16x128xf32>
    %42 = arith.addf %40, %41 : vector<16x128xf32>
    %c0_41 = arith.constant 0 : index
    %c0_42 = arith.constant 0 : index
    %43 = vector.load %arg15[%c0_41, %c0_42] : memref<16x128xf32, #tpu.memory_space<vmem>>, vector<16x128xf32>
    tpu.vector_store %arg15[%c0_41, %c0_42], %42 {strides = array<i32>} : memref<16x128xf32, #tpu.memory_space<vmem>>, vector<16x128xf32>,
    return
  }
  func.func @transform_0(%arg0: i32) -> (i32, i32) {
    %c0_i32 = arith.constant 0 : i32
    %c0_i32_0 = arith.constant 0 : i32
    %c0_i32_1 = arith.constant 0 : i32
    return %c0_i32, %c0_i32_0 : i32, i32
  }
  func.func @transform_1(%arg0: i32) -> (i32, i32) {
    %c0_i32 = arith.constant 0 : i32
    %c0_i32_0 = arith.constant 0 : i32
    %c0_i32_1 = arith.constant 0 : i32
    return %c0_i32, %c0_i32_0 : i32, i32
  }
  func.func @transform_2(%arg0: i32) -> (i32, i32) {
    %c0_i32 = arith.constant 0 : i32
    %c0_i32_0 = arith.constant 0 : i32
    %c0_i32_1 = arith.constant 0 : i32
    return %c0_i32, %c0_i32_0 : i32, i32
  }
  func.func @transform_3(%arg0: i32) -> (i32, i32) {
    %c0_i32 = arith.constant 0 : i32
    %c0_i32_0 = arith.constant 0 : i32
    %c0_i32_1 = arith.constant 0 : i32
    return %c0_i32, %c0_i32_0 : i32, i32
  }
  func.func @transform_4(%arg0: i32) -> (i32, i32) {
    %c0_i32 = arith.constant 0 : i32
    %c0_i32_0 = arith.constant 0 : i32
    %c0_i32_1 = arith.constant 0 : i32
    return %c0_i32, %c0_i32_0 : i32, i32
  }
  func.func @transform_5(%arg0: i32) -> (i32, i32) {
    %c0_i32 = arith.constant 0 : i32
    %c0_i32_0 = arith.constant 0 : i32
    %c0_i32_1 = arith.constant 0 : i32
    return %c0_i32, %c0_i32_0 : i32, i32
  }
  func.func @transform_6(%arg0: i32) -> (i32, i32) {
    %c0_i32 = arith.constant 0 : i32
    %c0_i32_0 = arith.constant 0 : i32
    %c0_i32_1 = arith.constant 0 : i32
    return %c0_i32, %c0_i32_0 : i32, i32
  }
  func.func @transform_7(%arg0: i32) -> (i32, i32) {
    %c0_i32 = arith.constant 0 : i32
    %c0_i32_0 = arith.constant 0 : i32
    %c0_i32_1 = arith.constant 0 : i32
    return %c0_i32, %c0_i32_0 : i32, i32
  }
  func.func @transform_8(%arg0: i32) -> (i32, i32) {
    %c0_i32 = arith.constant 0 : i32
    %c0_i32_0 = arith.constant 0 : i32
    %c0_i32_1 = arith.constant 0 : i32
    return %c0_i32, %c0_i32_0 : i32, i32
  }
  func.func @transform_9(%arg0: i32) -> (i32, i32) {
    %c0_i32 = arith.constant 0 : i32
    %c0_i32_0 = arith.constant 0 : i32
    %c0_i32_1 = arith.constant 0 : i32
    return %c0_i32, %c0_i32_0 : i32, i32
  }
  func.func @transform_10(%arg0: i32) -> (i32, i32) {
    %c0_i32 = arith.constant 0 : i32
    %c0_i32_0 = arith.constant 0 : i32
    %c0_i32_1 = arith.constant 0 : i32
    return %c0_i32, %c0_i32_0 : i32, i32
  }
  func.func @transform_11(%arg0: i32) -> (i32, i32) {
    %c0_i32 = arith.constant 0 : i32
    %c0_i32_0 = arith.constant 0 : i32
    %c0_i32_1 = arith.constant 0 : i32
    return %c0_i32, %c0_i32_0 : i32, i32
  }
  func.func @transform_12(%arg0: i32) -> (i32, i32) {
    %c0_i32 = arith.constant 0 : i32
    %c0_i32_0 = arith.constant 0 : i32
    %c0_i32_1 = arith.constant 0 : i32
    return %c0_i32, %c0_i32_0 : i32, i32
  }
  func.func @transform_13(%arg0: i32) -> (i32, i32) {
    %c0_i32 = arith.constant 0 : i32
    %c0_i32_0 = arith.constant 0 : i32
    %c0_i32_1 = arith.constant 0 : i32
    return %c0_i32, %c0_i32_0 : i32, i32
  }
  func.func @transform_14(%arg0: i32) -> (i32, i32) {
    %c0_i32 = arith.constant 0 : i32
    %c0_i32_0 = arith.constant 0 : i32
    %c0_i32_1 = arith.constant 0 : i32
    return %c0_i32, %c0_i32_0 : i32, i32
  }
}

</mosaic_0001>

<bundles_post_ra>
// kernel: tpu_custom_call.1
= control target key start
LH: loop header
LB: loop body
LE: loop exit
PB: predicated region body
PF: predicated region fallthrough
CT: control target
= control target key end

     0   :  { %19 = vsyncpa [#allocation3], 0  ;;  %s1696_s0 = inlined_call_operand.vmem [shape: f32[16,8], index: 0, kind: input, shape index: {}]   ;;  %s1697_s1 = inlined_call_operand.hbm [shape: f32[16,16], index: 1, kind: input, shape index: {}]   ;;  %s1698_s2 = inlined_call_operand.vmem [shape: f32[8,32], index: 2, kind: input, shape index: {}]   ;;  %s1699_s3 = inlined_call_operand.vmem [shape: f32[1,32], index: 3, kind: input, shape index: {}]   ;;  %s1700_s4 = inlined_call_operand.hbm [shape: f32[32,32], index: 4, kind: input, shape index: {}]   ;;  %s1701_s5 = inlined_call_operand.vmem [shape: f32[1,32], index: 5, kind: input, shape index: {}]   ;;  %s1702_s6 = inlined_call_operand.hbm [shape: f32[8,32], index: 6, kind: input, shape index: {}]   ;;  %s1703_s7 = inlined_call_operand.hbm [shape: f32[8,32], index: 7, kind: input, shape index: {}]   ;;  %s1704_s8 = inlined_call_operand.hbm [shape: f32[8,32], index: 8, kind: input, shape index: {}]   ;;  %s1705_s9 = inlined_call_operand.hbm [shape: f32[8,32], index: 9, kind: input, shape index: {}]   ;;  %s1706_s10 = inlined_call_operand.vmem [shape: f32[1,32], index: 10, kind: input, shape index: {}]   ;;  %s1707_s11 = inlined_call_operand.vmem [shape: f32[32,128], index: 11, kind: input, shape index: {}]   ;;  %s1708_s12 = inlined_call_operand.hbm [shape: f32[32,128], index: 12, kind: input, shape index: {}]   ;;  %s1709_s13 = inlined_call_operand.vmem [shape: f32[1,128], index: 13, kind: input, shape index: {}]   ;;  %s1710_s14 = inlined_call_operand.hbm [shape: f32[16,128], index: 14, kind: output, shape index: {}]  }
   0x1   :  { %20 = vsyncpa [#allocation6], 0 }
   0x2   :  { %21 = vsyncpa [#allocation9], 0 }
   0x3   :  { %22 = vsyncpa [#allocation12], 0 }
   0x4   :  { %23 = vsyncpa [#allocation4], 0  ;;  %s1512_s29 = smov [#allocation5]   ;;  %s1513_s15 = smov [#allocation8]  }
   0x5   :  { %s47_s30 = sshll.u32 %s1512_s29, 4  ;;  %s72_s16 = sshll.u32 %s1513_s15, 4  ;;  %s48_s30 = int_to_ptr.vmem [resolvable:$true] %s47_s30  ;;  %s73_s16 = int_to_ptr.vmem [resolvable:$true] %s72_s16 }
   0x6   :  { %s1350_s17 = scalar_lea.vmem %s48_s30, 512  ;;  %p1355_p1 = scmp.lt.s32.totalorder %s48_s30, %s48_s30 }
   0x7   :  { %p1351_p0 = scmp.ne.s32.totalorder %s48_s30, %s1350_s17  ;;  %p1356_p2 = scmp.lt.s32.totalorder %s1350_s17, %s1350_s17 }
   0x9   :  { %p1357_p3 = por %p1356_p2, %p1355_p1 }
   0xb   :  { %p1358_p4 = pnand %p1357_p3, %p1351_p0 }
   0xd   :  { %1361 = shalt.err (!%p1358_p4)
}
   0xe   :  { %s1514_s18 = smov 128   ;;  %s1515_s19 = smov 8  }
   0xf   :  { %53 = dma.hbm_to_vmem [thread:$0]  %s1700_s4, 512, %s48_s30, [#allocation6], %s1514_s18, %s1514_s18, %s1515_s19  }
  0x10   :  { %s1370_s22 = scalar_lea.vmem %s73_s16, 128  ;;  %p1375_p6 = scmp.lt.s32.totalorder %s73_s16, %s73_s16 }
  0x11   :  { %p1371_p5 = scmp.ne.s32.totalorder %s73_s16, %s1370_s22  ;;  %p1376_p7 = scmp.lt.s32.totalorder %s1370_s22, %s1370_s22 }
  0x13   :  { %p1377_p8 = por %p1376_p7, %p1375_p6 }
  0x15   :  { %p1378_p9 = pnand %p1377_p8, %p1371_p5 }
  0x17   :  { %1381 = shalt.err (!%p1378_p9)
}
  0x18   :  { %75 = dma.hbm_to_vmem [thread:$0]  %s1703_s7, 128, %s73_s16, [#allocation9]  }
  0x19   :  { %s1516_s25 = smov [#allocation11]   ;;  %s1517_s27 = smov [#allocation2]  }
  0x1a   :  { %s92_s26 = sshll.u32 %s1516_s25, 4  ;;  %s31_s28 = sshll.u32 %s1517_s27, 4  ;;  %s93_s26 = int_to_ptr.vmem [resolvable:$true] %s92_s26  ;;  %s32_s28 = int_to_ptr.vmem [resolvable:$true] %s31_s28 }
  0x1b   :  { %s1390_s29 = scalar_lea.vmem %s93_s26, 128  ;;  %p1395_p11 = scmp.lt.s32.totalorder %s93_s26, %s93_s26 }
  0x1c   :  { %p1391_p10 = scmp.ne.s32.totalorder %s93_s26, %s1390_s29  ;;  %p1396_p12 = scmp.lt.s32.totalorder %s1390_s29, %s1390_s29 }
  0x1e   :  { %p1397_p13 = por %p1396_p12, %p1395_p11 }
  0x20   :  { %p1398_p0 = pnand %p1397_p13, %p1391_p10 }
  0x22   :  { %1401 = shalt.err (!%p1398_p0)
}
  0x23   :  { %95 = dma.hbm_to_vmem [thread:$0]  %s1705_s9, 128, %s93_s26, [#allocation12]  }
  0x24   :  { %s1410_s15 = scalar_lea.vmem %s32_s28, 256  ;;  %p1415_p2 = scmp.lt.s32.totalorder %s32_s28, %s32_s28 }
  0x25   :  { %p1411_p1 = scmp.ne.s32.totalorder %s32_s28, %s1410_s15  ;;  %p1416_p3 = scmp.lt.s32.totalorder %s1410_s15, %s1410_s15 }
  0x27   :  { %p1417_p4 = por %p1416_p3, %p1415_p2 }
  0x29   :  { %p1418_p5 = pnand %p1417_p4, %p1411_p1 }
  0x2b   :  { %1421 = shalt.err (!%p1418_p5)
}
  0x2c   :  { %37 = dma.hbm_to_vmem [thread:$0]  %s1697_s1, 256, %s32_s28, [#allocation3], %s1514_s18, %s1514_s18, %s1515_s19  }
  0x2d   :  { %s1518_s17 = smov [#allocation7]   ;;  %s1519_s21 = smov [#allocation10]  }
  0x2e   :  { %s62_s20 = sshll.u32 %s1518_s17, 4  ;;  %s82_s22 = sshll.u32 %s1519_s21, 4  ;;  %s63_s20 = int_to_ptr.vmem [resolvable:$true] %s62_s20  ;;  %s83_s22 = int_to_ptr.vmem [resolvable:$true] %s82_s22 }
  0x2f   :  { %s1430_s9 = scalar_lea.vmem %s63_s20, 128  ;;  %p1435_p7 = scmp.lt.s32.totalorder %s63_s20, %s63_s20 }
  0x30   :  { %p1431_p6 = scmp.ne.s32.totalorder %s63_s20, %s1430_s9  ;;  %p1436_p8 = scmp.lt.s32.totalorder %s1430_s9, %s1430_s9 }
  0x32   :  { %p1437_p9 = por %p1436_p8, %p1435_p7 }
  0x34   :  { %p1438_p10 = pnand %p1437_p9, %p1431_p6 }
  0x36   :  { %1441 = shalt.err (!%p1438_p10)
}
  0x37   :  { %65 = dma.hbm_to_vmem [thread:$0]  %s1702_s6, 128, %s63_s20, [#allocation6]  }
  0x38   :  { %s1450_s25 = scalar_lea.vmem %s83_s22, 128  ;;  %p1455_p12 = scmp.lt.s32.totalorder %s83_s22, %s83_s22 }
  0x39   :  { %p1451_p11 = scmp.ne.s32.totalorder %s83_s22, %s1450_s25  ;;  %p1456_p13 = scmp.lt.s32.totalorder %s1450_s25, %s1450_s25 }
  0x3b   :  { %p1457_p0 = por %p1456_p13, %p1455_p12 }
  0x3d   :  { %p1458_p1 = pnand %p1457_p0, %p1451_p11 }
  0x3f   :  { %1461 = shalt.err (!%p1458_p1)
}
  0x40   :  { %85 = dma.hbm_to_vmem [thread:$0]  %s1704_s8, 128, %s83_s22, [#allocation9]  }
  0x41   :  { %s1520_s27 = smov [#allocation13]  }
  0x42   :  { %s105_s28 = sshll.u32 %s1520_s27, 4  ;;  %s106_s28 = int_to_ptr.vmem [resolvable:$true] %s105_s28 }
  0x43   :  { %s1470_s29 = scalar_lea.vmem %s106_s28, 512  ;;  %p1475_p3 = scmp.lt.s32.totalorder %s106_s28, %s106_s28 }
  0x44   :  { %p1471_p2 = scmp.ne.s32.totalorder %s106_s28, %s1470_s29  ;;  %p1476_p4 = scmp.lt.s32.totalorder %s1470_s29, %s1470_s29 }
  0x46   :  { %p1477_p5 = por %p1476_p4, %p1475_p3 }
  0x48   :  { %p1478_p6 = pnand %p1477_p5, %p1471_p2 }
  0x4a   :  { %1481 = shalt.err (!%p1478_p6)
}
  0x4b   :  { %111 = dma.hbm_to_vmem [thread:$0]  %s1708_s12, 512, %s106_s28, [#allocation12], %s1514_s18, %s1514_s18, %s1515_s19  }
  0x4c   :  { %1502 = dma.done.wait [#allocation3], 256  }
  0x4d   :  { %1503 = vsyncadd [#allocation3], 4294967040 }
  0x4e   :  { %1504 = dma.done.wait [#allocation6], 640  }
  0x4f   :  { %1505 = vsyncadd [#allocation6], 4294966656 }
  0x50   :  { %1506 = dma.done.wait [#allocation9], 256  }
  0x51   :  { %1507 = vsyncadd [#allocation9], 4294967040 }
  0x52   :  { %1508 = dma.done.wait [#allocation12], 640  }
  0x53   :  { %1509 = vsyncadd [#allocation12], 4294966656  ;;  %vm141_vm0 = vcmask 130048   ;;  %v136_v0 = vld [vmem:[%s1696_s0 + $0x8] sm:$0xff]  ;;  %v135_v1 = vld [vmem:[%s1696_s0] sm:$0xff]  ;;  %vm229_vm1 = vcmask 64512  }
  0x54   :  { %v137_v2 = vld [vmem:[#allocation2] sm:$0xff]  ;;  %1246 = vmatprep.subr.mxu0 %v136_v0  ;;  %v1634_v3 = vld [vmem:[#allocation2 + $0x8] sm:$0xff]  ;;  %v314_v6 = vld [vmem:[#allocation5 + $0x8] sm:$0xff]  ;;  %vm399_vm2 = vcmask 261120  }
  0x55   :  { %1250 = vmatprep.mubr.msk.f32.mxu0 %vm141_vm0, %v137_v2  ;;  %1247 = vmatpush3.msra.mxu0 %v136_v0  ;;  %v316_v4 = vld [vmem:[#allocation5 + $0x18] sm:$0xff]  ;;  %v315_v5 = vld [vmem:[#allocation5 + $0x10] sm:$0xff]  ;;  %v313_v7 = vld [vmem:[#allocation5] sm:$0xff] }
  0x56   :  { %1248 = vmatprep.subr.mxu0 %v135_v1  ;;  %v139_v8 = vld [vmem:[%s1698_s2] sm:$0xff]  ;;  %v482_v18 = vld [vmem:[#allocation8] sm:$0xff]  ;;  %v481_v19 = vld [vmem:[#allocation7] sm:$0xff] }
  0x57   :  { %1249 = vmatpush3.msra.mxu0 %v135_v1  ;;  %1253 = vmatprep.subr.mxu1 %v139_v8  ;;  %v1171_v11 = vld [vmem:[%s1699_s3] ss:$0 sm:$0xff]  ;;  %v484_v27 = vld [vmem:[#allocation11] sm:$0xff]  ;;  %v971_v28 = vld [vmem:[%s1707_s11 + $0x18] sm:$0xff] }
  0x58   :  { %1251 = vmatmul.mubr.msk.f32.vlgmr.msra.gmra.mxu0 %vm141_vm0, %v1634_v3  ;;  %1265 = vmatprep.subr.mxu0 %v316_v4  ;;  %v483_v22 = vld [vmem:[#allocation10] sm:$0xff]  ;;  %v970_v33 = vld [vmem:[%s1707_s11 + $0x10] sm:$0xff]  ;;  %v969_v34 = vld [vmem:[%s1707_s11 + $0x8] sm:$0xff] }
  0x59   :  { %1266 = vmatpush3.msra.mxu0 %v316_v4  ;;  %1254 = vmatpush3.msra.mxu1 %v139_v8  ;;  %v1176_v30 = vld [vmem:[%s1701_s5] ss:$0 sm:$0xff]  ;;  %v975_v37 = vld [vmem:[#allocation13 + $0x18] sm:$0xff]  ;;  %v973_v39 = vld [vmem:[#allocation13 + $0x8] sm:$0xff] }
  0x5a   :  { %1267 = vmatprep.subr.mxu0 %v315_v5  ;;  %v968_v35 = vld [vmem:[%s1707_s11] sm:$0xff]  ;;  %v972_v40 = vld [vmem:[#allocation13] sm:$0xff] }
  0x5b   :  { %1268 = vmatpush3.msra.mxu0 %v315_v5  ;;  %v974_v38 = vld [vmem:[#allocation13 + $0x10] sm:$0xff] }
  0x5c   :  { %1269 = vmatprep.subr.mxu0 %v314_v6  ;;  %v1191_v52 = vld [vmem:[%s1706_s10] ss:$0 sm:$0xff]  ;;  %s1521_s10 = smov [#allocation14]  }
  0x5d   :  { %1270 = vmatpush3.msra.mxu0 %v314_v6  ;;  %v1196_v61 = vld [vmem:[%s1709_s13] ss:$0 sm:$0xff]  ;;  %s1154_s28 = sshll.u32 %s1521_s10, 4  ;;  %s1155_s28 = int_to_ptr.vmem [resolvable:$true] %s1154_s28 }
  0x5e   :  { %1271 = vmatprep.subr.mxu0 %v313_v7  ;;  %s1482_s29 = scalar_lea.vmem %s1155_s28, 256  ;;  %p1487_p8 = scmp.lt.s32.totalorder %s1155_s28, %s1155_s28 }
  0x5f   :  { %1272 = vmatpush3.msra.mxu0 %v313_v7  ;;  %p1483_p7 = scmp.ne.s32.totalorder %s1155_s28, %s1482_s29  ;;  %p1488_p9 = scmp.lt.s32.totalorder %s1482_s29, %s1482_s29 }
  0x61   :  { %p1489_p10 = por %p1488_p9, %p1487_p8 }
  0x63   :  { %p1490_p11 = pnand %p1489_p10, %p1483_p7 }
 0x118   :  { %v1252_v9 = vpop.f32.mrf.mxu0 }
 0x119   :  { %1286 = vmatprep.subr.mxu0 %v1252_v9 }
 0x11a   :  { %v214_v10 = vpop.f32.mrf.mxu0 }
 0x11b   :  { %1255 = vmatprep.mubr.msk.f32.mxu1 %vm229_vm1, %v214_v10 }
 0x11c   :  { %1256 = vmatmul.mubr.msk.f32.vlgmr.msra.gmra.mxu1 %vm229_vm1, %v1252_v9 }
 0x11d   :  { %1262 = vmatprep.mubr.msk.f32.mxu1 %vm141_vm0, %v137_v2 }
 0x1dc   :  { %v1257_v12 = vpop.f32.mrf.mxu1 }
 0x1dd   :  { %v308_v13 = vadd.f32 %v1257_v12, %v1171_v11 }
 0x1de   :  { %v302_v14 = vpop.f32.mrf.mxu1 }
 0x1df   :  { %v312_v15 = vmax.f32 %v308_v13, 0.0  ;;  %v303_v16 = vadd.f32 %v1171_v11, %v302_v14 }
 0x1e1   :  { %v311_v17 = vmax.f32 %v303_v16, 0.0  ;;  %1258 = vmatprep.subr.mxu1 %v312_v15 }
 0x1e2   :  { %1259 = vmatpush3.msra.mxu1 %v312_v15 }
 0x1e3   :  { %1260 = vmatprep.subr.mxu1 %v311_v17 }
 0x1e4   :  { %1261 = vmatpush3.msra.mxu1 %v311_v17 }
 0x1e5   :  { %1263 = vmatmul.mubr.msk.f32.vlgmr.msra.gmra.mxu1 %vm141_vm0, %v1634_v3  ;;  %1276 = vmatprep.subr.mxu1 %v482_v18 }
 0x1e6   :  { %1278 = vmatprep.mubr.msk.f32.mxu1 %vm229_vm1, %v214_v10  ;;  %1277 = vmatpush3.msra.mxu1 %v482_v18 }
 0x1e7   :  { %1281 = vmatprep.subr.mxu1 %v481_v19 }
 0x1e9   :  { %1279 = vmatmul.mubr.msk.f32.vlgmr.msra.gmra.mxu1 %vm229_vm1, %v1252_v9 }
 0x1ea   :  { %1282 = vmatpush3.msra.mxu1 %v481_v19  ;;  %1283 = vmatprep.mubr.msk.f32.mxu1 %vm229_vm1, %v135_v1 }
 0x1eb   :  { %1293 = vmatprep.subr.mxu1 %v483_v22 }
 0x1ed   :  { %1284 = vmatmul.mubr.msk.f32.vlgmr.msra.gmra.mxu1 %vm229_vm1, %v136_v0 }
 0x1ee   :  { %1294 = vmatpush3.msra.mxu1 %v483_v22 }
 0x1ef   :  { %1305 = vmatprep.subr.mxu1 %v484_v27 }
 0x2a5   :  { %v1264_v20 = vpop.f32.mrf.mxu1 }
 0x2a7   :  { %v384_v21 = vpop.f32.mrf.mxu1 }
 0x2a8   :  { %1273 = vmatprep.mubr.msk.f32.mxu0 %vm399_vm2, %v384_v21 }
 0x2a9   :  { %1274 = vmatmul.mubr.msk.f32.vlgmr.msra.gmra.mxu0 %vm399_vm2, %v1264_v20  ;;  %v1280_v41 = vpop.f32.mrf.mxu1 }
 0x2aa   :  { %1287 = vmatpush3.msra.mxu0 %v1252_v9  ;;  %1290 = vmatprep.mubr.msk.f32.mxu0 %vm141_vm0, %v137_v2 }
 0x2ab   :  { %1288 = vmatprep.subr.mxu0 %v214_v10  ;;  %v552_v42 = vpop.f32.mrf.mxu1 }
 0x2ac   :  { %1289 = vmatpush3.msra.mxu0 %v214_v10 }
 0x2ad   :  { %1291 = vmatmul.mubr.msk.f32.vlgmr.msra.gmra.mxu0 %vm141_vm0, %v1634_v3  ;;  %v1285_v43 = vpop.f32.mrf.mxu1 }
 0x2ae   :  { %1302 = vmatprep.mubr.msk.f32.mxu0 %vm141_vm0, %v137_v2  ;;  %v639_v46 = vadd.f32 %v1285_v43, %v1280_v41 }
 0x2af   :  { %v633_v44 = vpop.f32.mrf.mxu1 }
 0x2b0   :  { %v634_v48 = vadd.f32 %v633_v44, %v552_v42 }
 0x369   :  { %v1275_v23 = vpop.f32.mrf.mxu0 }
 0x36a   :  { %v478_v36 = vadd.f32 %v1275_v23, %v1176_v30 }
 0x36b   :  { %v472_v24 = vpop.f32.mrf.mxu0 }
 0x36c   :  { %v473_v32 = vadd.f32 %v1176_v30, %v472_v24 }
 0x36d   :  { %v1292_v25 = vpop.f32.mrf.mxu0 }
 0x36e   :  { %1298 = vmatprep.subr.mxu0 %v1292_v25 }
 0x36f   :  { %v708_v26 = vpop.f32.mrf.mxu0  ;;  %1299 = vmatpush3.msra.mxu0 %v1292_v25 }
 0x370   :  { %1295 = vmatprep.mubr.msk.f32.mxu1 %vm229_vm1, %v708_v26  ;;  %1300 = vmatprep.subr.mxu0 %v708_v26 }
 0x371   :  { %1296 = vmatmul.mubr.msk.f32.vlgmr.msra.gmra.mxu1 %vm229_vm1, %v1292_v25  ;;  %1301 = vmatpush3.msra.mxu0 %v708_v26 }
 0x372   :  { %1303 = vmatmul.mubr.msk.f32.vlgmr.msra.gmra.mxu0 %vm141_vm0, %v1634_v3  ;;  %1306 = vmatpush3.msra.mxu1 %v484_v27 }
 0x373   :  { %1321 = vmatprep.subr.mxu1 %v971_v28  ;;  %1310 = vmatprep.subr.mxu0 %v975_v37 }
 0x374   :  { %1311 = vmatpush3.msra.mxu0 %v975_v37 }
 0x375   :  { %1312 = vmatprep.subr.mxu0 %v974_v38 }
 0x376   :  { %1313 = vmatpush3.msra.mxu0 %v974_v38 }
 0x377   :  { %1314 = vmatprep.subr.mxu0 %v973_v39 }
 0x378   :  { %1315 = vmatpush3.msra.mxu0 %v973_v39 }
 0x379   :  { %1316 = vmatprep.subr.mxu0 %v972_v40 }
 0x37a   :  { %1317 = vmatpush3.msra.mxu0 %v972_v40 }
 0x431   :  { %v1297_v45 = vpop.f32.mrf.mxu1 }
 0x432   :  { %v1304_v29 = vpop.f32.mrf.mxu0  ;;  %v799_v49 = vadd.f32 %v1297_v45, %v639_v46 }
 0x433   :  { %v789_v47 = vpop.f32.mrf.mxu1 }
 0x434   :  { %v866_v31 = vpop.f32.mrf.mxu0  ;;  %v798_v51 = vadd.f32 %v789_v47, %v634_v48 }
 0x435   :  { %1307 = vmatprep.mubr.msk.f32.mxu1 %vm229_vm1, %v866_v31 }
 0x436   :  { %1308 = vmatmul.mubr.msk.f32.vlgmr.msra.gmra.mxu1 %vm229_vm1, %v1304_v29 }
 0x437   :  { %1322 = vmatpush3.msra.mxu1 %v971_v28  ;;  %1329 = vmatprep.mubr.msk.f32.mxu1 %vm399_vm2, %v473_v32 }
 0x438   :  { %1323 = vmatprep.subr.mxu1 %v970_v33 }
 0x439   :  { %1324 = vmatpush3.msra.mxu1 %v970_v33 }
 0x43a   :  { %1325 = vmatprep.subr.mxu1 %v969_v34 }
 0x43b   :  { %1326 = vmatpush3.msra.mxu1 %v969_v34 }
 0x43c   :  { %1327 = vmatprep.subr.mxu1 %v968_v35 }
 0x43d   :  { %1328 = vmatpush3.msra.mxu1 %v968_v35 }
 0x43e   :  { %1330 = vmatmul.mubr.msk.f32.vlgmr.msra.gmra.mxu1 %vm399_vm2, %v478_v36 }
 0x4f6   :  { %v1309_v50 = vpop.f32.mrf.mxu1 }
 0x4f7   :  { %v957_v53 = vadd.f32 %v1309_v50, %v799_v49 }
 0x4f8   :  { %v947_v54 = vpop.f32.mrf.mxu1 }
 0x4f9   :  { %v956_v55 = vadd.f32 %v947_v54, %v798_v51  ;;  %v965_v56 = vadd.f32 %v1191_v52, %v957_v53 }
 0x4fb   :  { %v964_v57 = vadd.f32 %v1191_v52, %v956_v55  ;;  %v967_v59 = vmax.f32 %v965_v56, 0.0 }
 0x4fd   :  { %v966_v58 = vmax.f32 %v964_v57, 0.0 }
 0x4fe   :  { %v1331_v60 = vpop.f32.mrf.mxu1 }
 0x4ff   :  { %1318 = vmatprep.mubr.msk.f32.mxu0 %vm399_vm2, %v966_v58 }
 0x500   :  { %1319 = vmatmul.mubr.msk.f32.vlgmr.msra.gmra.mxu0 %vm399_vm2, %v967_v59  ;;  %v1130_v0 = vpop.f32.mrf.mxu1 }
 0x5c0   :  { %v1320_v62 = vpop.f32.mrf.mxu0 }
 0x5c1   :  { %v1136_v63 = vadd.f32 %v1331_v60, %v1320_v62 }
 0x5c2   :  { %v1049_v1 = vpop.f32.mrf.mxu0 }
 0x5c3   :  { %v1146_v2 = vadd.f32 %v1196_v61, %v1136_v63  ;;  %v1131_v3 = vadd.f32 %v1130_v0, %v1049_v1 }
 0x5c5   :  { %1148 = vst [vmem:[#allocation14 + $0x8] sm:$0xff] %v1146_v2  ;;  %v1145_v4 = vadd.f32 %v1196_v61, %v1131_v3 }
 0x5c7   :  { %1147 = vst [vmem:[#allocation14] sm:$0xff] %v1145_v4 }
 0x5c8   :  { %1493 = shalt.err (!%p1490_p11)
}
 0x5c9   :  { %1160 = dma.vmem_to_hbm [thread:$0]  %s1155_s28, 256, %s1710_s14, [#allocation4], %s1514_s18, %s1514_s18, %s1515_s19  }
 0x5ca   :  { %1510 = dma.done.wait [#allocation4], 256  }
 0x5cb   :  { %1511 = vsyncadd [#allocation4], 4294967040 }
 0x5cc   :  { %1164 = vsyncpa [#allocation3], 1 }
 0x5cd   :  { %1165 = vsyncpa [#allocation6], 1 }
 0x5ce   :  { %1166 = vsyncpa [#allocation9], 1 }
 0x5cf   :  { %1167 = vsyncpa [#allocation12], 1 }
 0x5d0   :  { %1168 = vsyncpa [#allocation4], 1 }

</bundles_post_ra>
